<compile_context>
chip_gen: v7x
topology: tpu7x:2x2x1
jax: 0.10.0
libtpu: 0.0.40
codegen_flags: <defaults>
</compile_context>

<pallas_src>
import jax
import jax.numpy as jnp
from jax.experimental import pallas as pl
from jax.experimental.pallas import tpu as pltpu


def _make_coordconv_kernel(neg_slope, cin, use_mxu):
    def kernel(x_ref, w_ref, wxx_ref, wyy_ref, shift_ref, xx_ref, yy_ref, o_ref):
        # x_ref:     (1, Cin, T)   spatial tile of one batch element (lane = HW)
        # w_ref:     (Cout, Cin)   conv weights with BN scale folded in
        # wxx_ref:   (Cout, 1)     folded weight column of the xx coord channel
        # wyy_ref:   (Cout, 1)     folded weight column of the yy coord channel
        # shift_ref: (Cout, 1)     folded BN shift (beta - mean * scale)
        # xx_ref:    (1, T)        xx coordinate values for this spatial tile
        # yy_ref:    (1, T)        yy coordinate values for this spatial tile
        # o_ref:     (1, Cout, T)
        # Coordinate channels fused as two rank-1 (outer-product) updates,
        # plus the folded BatchNorm shift.
        y = (wxx_ref[...] * xx_ref[...]
             + wyy_ref[...] * yy_ref[...]
             + shift_ref[...])                                   # (Cout, T)
        if use_mxu:
            y = y + jnp.dot(w_ref[...], x_ref[0],
                            preferred_element_type=jnp.float32)
        else:
            # Tiny channel count: unrolled VPU broadcast-FMAs beat an almost
            # empty MXU tile and overlap with the tile DMAs.
            for c in range(cin):
                y = y + w_ref[:, c:c + 1] * x_ref[0, c:c + 1, :]
        y = jnp.where(y >= 0.0, y, neg_slope * y)                # LeakyReLU(0.1)
        o_ref[0] = y.astype(o_ref.dtype)

    return kernel


def _pick_spatial_tile(HW, Cin, Cout, itemsize=4, budget_bytes=8 << 20):
    """Lane tile T: multiple of 128, <= HW, double-buffered tiles << VMEM."""
    if HW < 128:
        return HW                      # block must equal the full (short) lane dim
    t = min(2048, (HW // 128) * 128)
    while t > 128 and 2 * (Cin + Cout) * t * itemsize > budget_bytes:
        t -= 128
    return t


@jax.jit
def coordconv_forward(x_nchw, conv_w, gamma, beta, running_mean, running_var):
    """CoordConv forward (with_r=False, eval-mode BatchNorm).

    x_nchw : (B, Cin, H, W)           float32 (PyTorch layout)
    conv_w : (Cout, Cin + 2, 1, 1)    float32 (Conv2d weight, bias=False)
    gamma, beta, running_mean, running_var : (Cout,) BatchNorm2d params
    returns: (B, Cout, H, W)
    """
    B, Cin, H, W = x_nchw.shape
    Cout = conv_w.shape[0]
    HW = H * W
    eps = 1e-5
    neg_slope = 0.1

    # Channels-first flatten: pure reshape, no transpose / extra HBM copy.
    x_flat = x_nchw.reshape(B, Cin, HW)

    # Fold eval-mode BatchNorm into the conv:
    #   y = (W_full @ cat) * scale + shift = (scale * W_full) @ cat + shift.
    scale = gamma / jnp.sqrt(running_var + eps)                 # (Cout,)
    shift = (beta - running_mean * scale)[:, None]              # (Cout, 1)
    w_full = conv_w[:, :, 0, 0] * scale[:, None]                # (Cout, Cin+2)
    w_main = w_full[:, :Cin]                                    # (Cout, Cin)
    w_xx = w_full[:, Cin][:, None]                              # (Cout, 1)
    w_yy = w_full[:, Cin + 1][:, None]                          # (Cout, 1)

    # AddCoords coordinate channels on the flattened H*W axis:
    #   xx[., i, j] = 2*i/(H-1) - 1 (varies along H),
    #   yy[., i, j] = 2*j/(W-1) - 1 (varies along W).
    # TODO(synk): H == 1 or W == 1 divides by zero, same as PyTorch AddCoords.
    # TODO(synk): with_r=True radial channel not implemented (module default
    # is with_r=False).
    xx_row = 2.0 * jnp.arange(H, dtype=jnp.float32) / (H - 1) - 1.0
    yy_row = 2.0 * jnp.arange(W, dtype=jnp.float32) / (W - 1) - 1.0

    T = _pick_spatial_tile(HW, Cin, Cout)
    nT = -(-HW // T)                                            # cdiv
    hw_pad = nT * T                                             # coord vecs padded
    xx_flat = jnp.pad(jnp.repeat(xx_row, W), (0, hw_pad - HW))[None, :]  # (1, hw_pad)
    yy_flat = jnp.pad(jnp.tile(yy_row, H), (0, hw_pad - HW))[None, :]    # (1, hw_pad)

    kernel = _make_coordconv_kernel(neg_slope, Cin,
                                    use_mxu=min(Cin, Cout) >= 16)

    out_flat = pl.pallas_call(
        kernel,
        out_shape=jax.ShapeDtypeStruct((B, Cout, HW), x_nchw.dtype),
        grid=(B, nT),
        in_specs=[
            pl.BlockSpec((1, Cin, T), lambda b, t: (b, 0, t)),   # x tile
            pl.BlockSpec((Cout, Cin), lambda b, t: (0, 0)),      # folded conv W
            pl.BlockSpec((Cout, 1), lambda b, t: (0, 0)),        # xx weight col
            pl.BlockSpec((Cout, 1), lambda b, t: (0, 0)),        # yy weight col
            pl.BlockSpec((Cout, 1), lambda b, t: (0, 0)),        # BN shift
            pl.BlockSpec((1, T), lambda b, t: (0, t)),           # xx coords
            pl.BlockSpec((1, T), lambda b, t: (0, t)),           # yy coords
        ],
        out_specs=pl.BlockSpec((1, Cout, T), lambda b, t: (b, 0, t)),
        compiler_params=pltpu.CompilerParams(
            dimension_semantics=("parallel", "parallel"),
            vmem_limit_bytes=32 * 1024 * 1024,
        ),
    )(x_flat, w_main, w_xx, w_yy, shift, xx_flat, yy_flat)

    return out_flat.reshape(B, Cout, H, W)


def _reference_forward(x_nchw, conv_w, gamma, beta, running_mean, running_var):
    """Pure-jnp reference mirroring the PyTorch graph (eval-mode BN)."""
    B, Cin, H, W = x_nchw.shape
    eps = 1e-5
    i = jnp.arange(H, dtype=jnp.float32)
    j = jnp.arange(W, dtype=jnp.float32)
    xx = (2.0 * i / (H - 1) - 1.0)[None, None, :, None]
    xx = jnp.broadcast_to(xx, (B, 1, H, W))
    yy = (2.0 * j / (W - 1) - 1.0)[None, None, None, :]
    yy = jnp.broadcast_to(yy, (B, 1, H, W))
    cat = jnp.concatenate([x_nchw, xx, yy], axis=1)            # (B, Cin+2, H, W)
    w = conv_w[:, :, 0, 0]                                     # (Cout, Cin+2)
    y = jnp.einsum("bchw,oc->bohw", cat, w)
    scale = gamma / jnp.sqrt(running_var + eps)
    shift = beta - running_mean * scale
    y = y * scale[None, :, None, None] + shift[None, :, None, None]
    return jnp.where(y >= 0.0, y, 0.1 * y)


if __name__ == "__main__":
    # Small shapes consistent with the module's forward: NCHW input.
    B, Cin, H, W = 2, 4, 16, 16
    Cout = 8

    key = jax.random.PRNGKey(0)
    k_x, k_w, k_g, k_b, k_m, k_v, k_x2 = jax.random.split(key, 7)

    x = jax.random.normal(k_x, (B, Cin, H, W), dtype=jnp.float32)
    conv_w = 0.1 * jax.random.normal(k_w, (Cout, Cin + 2, 1, 1), dtype=jnp.float32)
    gamma = 1.0 + 0.1 * jax.random.normal(k_g, (Cout,), dtype=jnp.float32)
    beta = 0.1 * jax.random.normal(k_b, (Cout,), dtype=jnp.float32)
    running_mean = 0.1 * jax.random.normal(k_m, (Cout,), dtype=jnp.float32)
    running_var = jnp.abs(1.0 + 0.1 * jax.random.normal(k_v, (Cout,), dtype=jnp.float32))

    out = jax.block_until_ready(
        coordconv_forward(x, conv_w, gamma, beta, running_mean, running_var))
    ref = _reference_forward(x, conv_w, gamma, beta, running_mean, running_var)
    assert out.shape == (B, Cout, H, W)
    assert jnp.allclose(out, ref, atol=1e-5, rtol=1e-5)

    # Second shape: H*W not a multiple of 128 -> exercises the partial
    # (clipped) final spatial tile path of the same kernel.
    H2 = W2 = 40
    x2 = jax.random.normal(k_x2, (B, Cin, H2, W2), dtype=jnp.float32)
    out2 = jax.block_until_ready(
        coordconv_forward(x2, conv_w, gamma, beta, running_mean, running_var))
    ref2 = _reference_forward(x2, conv_w, gamma, beta, running_mean, running_var)
    assert out2.shape == (B, Cout, H2, W2)
    assert jnp.allclose(out2, ref2, atol=1e-5, rtol=1e-5)

    print("KERNEL_OK")
</pallas_src>

<mosaic_0001>
module attributes {stable_mosaic.version = 11 : i64} {
  func.func @kernel(%arg0: i32, %arg1: i32, %arg2: memref<1x4x256xf32, #tpu.memory_space<vmem>>, %arg3: memref<8x4xf32, #tpu.memory_space<vmem>>, %arg4: memref<8x1xf32, #tpu.memory_space<vmem>>, %arg5: memref<8x1xf32, #tpu.memory_space<vmem>>, %arg6: memref<8x1xf32, #tpu.memory_space<vmem>>, %arg7: memref<1x256xf32, #tpu.memory_space<vmem>>, %arg8: memref<1x256xf32, #tpu.memory_space<vmem>>, %arg9: memref<1x8x256xf32, #tpu.memory_space<vmem>>) attributes {dimension_semantics = [#tpu.dimension_semantics<parallel>, #tpu.dimension_semantics<parallel>], iteration_bounds = array<i64: 2, 1>, scalar_prefetch = 0 : i64, scratch_operands = 0 : i64, tpu.core_type = #tpu.core_type<tc>, window_params = [{transform_indices = @transform_0, window_bounds = array<i64: 1, 4, 256>}, {pipeline_mode = #tpu.pipeline_mode<synchronous>, transform_indices = @transform_1, window_bounds = array<i64: 8, 4>}, {pipeline_mode = #tpu.pipeline_mode<synchronous>, transform_indices = @transform_2, window_bounds = array<i64: 8, 1>}, {pipeline_mode = #tpu.pipeline_mode<synchronous>, transform_indices = @transform_3, window_bounds = array<i64: 8, 1>}, {pipeline_mode = #tpu.pipeline_mode<synchronous>, transform_indices = @transform_4, window_bounds = array<i64: 8, 1>}, {transform_indices = @transform_5, window_bounds = array<i64: 1, 256>}, {transform_indices = @transform_6, window_bounds = array<i64: 1, 256>}, {transform_indices = @transform_7, window_bounds = array<i64: 1, 8, 256>}]} {
    %c0 = arith.constant 0 : index
    %c0_0 = arith.constant 0 : index
    %0 = vector.load %arg4[%c0, %c0_0] : memref<8x1xf32, #tpu.memory_space<vmem>>, vector<8x1xf32>
    %c0_1 = arith.constant 0 : index
    %c0_2 = arith.constant 0 : index
    %1 = vector.load %arg7[%c0_1, %c0_2] : memref<1x256xf32, #tpu.memory_space<vmem>>, vector<1x256xf32>
    %2 = vector.broadcast %0 : vector<8x1xf32> to vector<8x256xf32>
    %3 = vector.broadcast %1 : vector<1x256xf32> to vector<8x256xf32>
    %4 = arith.mulf %2, %3 : vector<8x256xf32>
    %c0_3 = arith.constant 0 : index
    %c0_4 = arith.constant 0 : index
    %5 = vector.load %arg5[%c0_3, %c0_4] : memref<8x1xf32, #tpu.memory_space<vmem>>, vector<8x1xf32>
    %c0_5 = arith.constant 0 : index
    %c0_6 = arith.constant 0 : index
    %6 = vector.load %arg8[%c0_5, %c0_6] : memref<1x256xf32, #tpu.memory_space<vmem>>, vector<1x256xf32>
    %7 = vector.broadcast %5 : vector<8x1xf32> to vector<8x256xf32>
    %8 = vector.broadcast %6 : vector<1x256xf32> to vector<8x256xf32>
    %9 = arith.mulf %7, %8 : vector<8x256xf32>
    %10 = arith.addf %4, %9 : vector<8x256xf32>
    %c0_7 = arith.constant 0 : index
    %c0_8 = arith.constant 0 : index
    %11 = vector.load %arg6[%c0_7, %c0_8] : memref<8x1xf32, #tpu.memory_space<vmem>>, vector<8x1xf32>
    %12 = vector.broadcast %11 : vector<8x1xf32> to vector<8x256xf32>
    %13 = arith.addf %10, %12 : vector<8x256xf32>
    %c0_9 = arith.constant 0 : index
    %c0_10 = arith.constant 0 : index
    %14 = vector.load %arg3[%c0_9, %c0_10] : memref<8x4xf32, #tpu.memory_space<vmem>>, vector<8x1xf32>
    %c0_11 = arith.constant 0 : index
    %c0_12 = arith.constant 0 : index
    %c0_13 = arith.constant 0 : index
    %15 = vector.load %arg2[%c0_11, %c0_12, %c0_13] : memref<1x4x256xf32, #tpu.memory_space<vmem>>, vector<1x1x256xf32>
    %16 = vector.shape_cast %15 : vector<1x1x256xf32> to vector<1x256xf32>
    %17 = vector.broadcast %14 : vector<8x1xf32> to vector<8x256xf32>
    %18 = vector.broadcast %16 : vector<1x256xf32> to vector<8x256xf32>
    %19 = arith.mulf %17, %18 : vector<8x256xf32>
    %20 = arith.addf %13, %19 : vector<8x256xf32>
    %c0_14 = arith.constant 0 : index
    %c1 = arith.constant 1 : index
    %21 = vector.load %arg3[%c0_14, %c1] : memref<8x4xf32, #tpu.memory_space<vmem>>, vector<8x1xf32>
    %c0_15 = arith.constant 0 : index
    %c1_16 = arith.constant 1 : index
    %c0_17 = arith.constant 0 : index
    %22 = vector.load %arg2[%c0_15, %c1_16, %c0_17] : memref<1x4x256xf32, #tpu.memory_space<vmem>>, vector<1x1x256xf32>
    %23 = vector.shape_cast %22 : vector<1x1x256xf32> to vector<1x256xf32>
    %24 = vector.broadcast %21 : vector<8x1xf32> to vector<8x256xf32>
    %25 = vector.broadcast %23 : vector<1x256xf32> to vector<8x256xf32>
    %26 = arith.mulf %24, %25 : vector<8x256xf32>
    %27 = arith.addf %20, %26 : vector<8x256xf32>
    %c0_18 = arith.constant 0 : index
    %c2 = arith.constant 2 : index
    %28 = vector.load %arg3[%c0_18, %c2] : memref<8x4xf32, #tpu.memory_space<vmem>>, vector<8x1xf32>
    %c0_19 = arith.constant 0 : index
    %c2_20 = arith.constant 2 : index
    %c0_21 = arith.constant 0 : index
    %29 = vector.load %arg2[%c0_19, %c2_20, %c0_21] : memref<1x4x256xf32, #tpu.memory_space<vmem>>, vector<1x1x256xf32>
    %30 = vector.shape_cast %29 : vector<1x1x256xf32> to vector<1x256xf32>
    %31 = vector.broadcast %28 : vector<8x1xf32> to vector<8x256xf32>
    %32 = vector.broadcast %30 : vector<1x256xf32> to vector<8x256xf32>
    %33 = arith.mulf %31, %32 : vector<8x256xf32>
    %34 = arith.addf %27, %33 : vector<8x256xf32>
    %c0_22 = arith.constant 0 : index
    %c3 = arith.constant 3 : index
    %35 = vector.load %arg3[%c0_22, %c3] : memref<8x4xf32, #tpu.memory_space<vmem>>, vector<8x1xf32>
    %c0_23 = arith.constant 0 : index
    %c3_24 = arith.constant 3 : index
    %c0_25 = arith.constant 0 : index
    %36 = vector.load %arg2[%c0_23, %c3_24, %c0_25] : memref<1x4x256xf32, #tpu.memory_space<vmem>>, vector<1x1x256xf32>
    %37 = vector.shape_cast %36 : vector<1x1x256xf32> to vector<1x256xf32>
    %38 = vector.broadcast %35 : vector<8x1xf32> to vector<8x256xf32>
    %39 = vector.broadcast %37 : vector<1x256xf32> to vector<8x256xf32>
    %40 = arith.mulf %38, %39 : vector<8x256xf32>
    %41 = arith.addf %34, %40 : vector<8x256xf32>
    %cst = arith.constant 0.000000e+00 : f32
    %42 = vector.broadcast %cst : f32 to vector<8x256xf32>
    %43 = arith.cmpf oge, %41, %42 : vector<8x256xf32>
    %cst_26 = arith.constant 1.000000e-01 : f32
    %44 = vector.broadcast %cst_26 : f32 to vector<8x256xf32>
    %45 = arith.mulf %44, %41 : vector<8x256xf32>
    %46 = arith.select %43, %41, %45 : vector<8x256xi1>, vector<8x256xf32>
    %c0_27 = arith.constant 0 : index
    %c0_28 = arith.constant 0 : index
    %c0_29 = arith.constant 0 : index
    %47 = vector.load %arg9[%c0_27, %c0_28, %c0_29] : memref<1x8x256xf32, #tpu.memory_space<vmem>>, vector<1x8x256xf32>
    %48 = vector.shape_cast %47 : vector<1x8x256xf32> to vector<8x256xf32>
    %49 = vector.shape_cast %46 : vector<8x256xf32> to vector<1x8x256xf32>
    tpu.vector_store %arg9[%c0_27, %c0_28, %c0_29], %49 {strides = array<i32>} : memref<1x8x256xf32, #tpu.memory_space<vmem>>, vector<1x8x256xf32>,
    return
  }
  func.func @transform_0(%arg0: i32, %arg1: i32) -> (i32, i32, i32) {
    %c0_i32 = arith.constant 0 : i32
    %c0_i32_0 = arith.constant 0 : i32
    return %arg0, %c0_i32, %arg1 : i32, i32, i32
  }
  func.func @transform_1(%arg0: i32, %arg1: i32) -> (i32, i32) {
    %c0_i32 = arith.constant 0 : i32
    %c0_i32_0 = arith.constant 0 : i32
    %c0_i32_1 = arith.constant 0 : i32
    return %c0_i32, %c0_i32_0 : i32, i32
  }
  func.func @transform_2(%arg0: i32, %arg1: i32) -> (i32, i32) {
    %c0_i32 = arith.constant 0 : i32
    %c0_i32_0 = arith.constant 0 : i32
    %c0_i32_1 = arith.constant 0 : i32
    return %c0_i32, %c0_i32_0 : i32, i32
  }
  func.func @transform_3(%arg0: i32, %arg1: i32) -> (i32, i32) {
    %c0_i32 = arith.constant 0 : i32
    %c0_i32_0 = arith.constant 0 : i32
    %c0_i32_1 = arith.constant 0 : i32
    return %c0_i32, %c0_i32_0 : i32, i32
  }
  func.func @transform_4(%arg0: i32, %arg1: i32) -> (i32, i32) {
    %c0_i32 = arith.constant 0 : i32
    %c0_i32_0 = arith.constant 0 : i32
    %c0_i32_1 = arith.constant 0 : i32
    return %c0_i32, %c0_i32_0 : i32, i32
  }
  func.func @transform_5(%arg0: i32, %arg1: i32) -> (i32, i32) {
    %c0_i32 = arith.constant 0 : i32
    %c0_i32_0 = arith.constant 0 : i32
    return %c0_i32, %arg1 : i32, i32
  }
  func.func @transform_6(%arg0: i32, %arg1: i32) -> (i32, i32) {
    %c0_i32 = arith.constant 0 : i32
    %c0_i32_0 = arith.constant 0 : i32
    return %c0_i32, %arg1 : i32, i32
  }
  func.func @transform_7(%arg0: i32, %arg1: i32) -> (i32, i32, i32) {
    %c0_i32 = arith.constant 0 : i32
    %c0_i32_0 = arith.constant 0 : i32
    return %arg0, %c0_i32, %arg1 : i32, i32, i32
  }
}

</mosaic_0001>

<bundles_post_ra>
// kernel: tile.8
= control target key start
LH: loop header
LB: loop body
LE: loop exit
PB: predicated region body
PF: predicated region fallthrough
CT: control target
= control target key end

     0   :  { %s28_s0 = inlined_call_operand.vmem [shape: f32[16], index: 0, kind: input, shape index: {}]   ;;  %s29_s1 = inlined_call_operand.vmem [shape: f32[16,16], index: 1, kind: output, shape index: {}]  }
   0x1   :  { %v4_v0 = vld [vmem:[%s28_s0] ss:$0 sm:$0xff] }
   0x2   :  { %5 = vst [vmem:[%s29_s1] sm:$0xff] %v4_v0  ;;  %8 = vst [vmem:[%s29_s1 + $0x8] sm:$0xff] %v4_v0 }

// kernel: coordconv_forward.1
= control target key start
LH: loop header
LB: loop body
LE: loop exit
PB: predicated region body
PF: predicated region fallthrough
CT: control target
= control target key end

     0   :  { %s730_s24 = smov 0   ;;  %s732_s25 = smov 0   ;;  %s789_s0 = inlined_call_operand.vmem [shape: f32[2,4,256], index: 0, kind: input, shape index: {}]   ;;  %s790_s1 = inlined_call_operand.vmem [shape: f32[8,4], index: 1, kind: input, shape index: {}]   ;;  %s791_s2 = inlined_call_operand.vmem [shape: f32[8,1], index: 2, kind: input, shape index: {}]   ;;  %s792_s3 = inlined_call_operand.vmem [shape: f32[8,1], index: 3, kind: input, shape index: {}]   ;;  %s793_s4 = inlined_call_operand.vmem [shape: f32[8,1], index: 4, kind: input, shape index: {}]   ;;  %s794_s5 = inlined_call_operand.vmem [shape: f32[1,256], index: 5, kind: input, shape index: {}]   ;;  %s795_s6 = inlined_call_operand.vmem [shape: f32[1,256], index: 6, kind: input, shape index: {}]   ;;  %s796_s7 = inlined_call_operand.vmem [shape: f32[2,8,256], index: 7, kind: output, shape index: {}]  }
   0x1   :  { %s734_s26 = smov 0  }
   0x2 LB: > { %s29_s27 = sadd.s32 1, %s680_s25  ;;  %p616_p0 = scmp.ge.s32.totalorder %s684_s26, 1  ;;  %s684_s26 = sphi %s734_s26, %s17_s26   ;;  %s680_s25 = sphi %s732_s25, %s798_s25   ;;  %s676_s24 = sphi %s730_s24, %s797_s24  }
   0x3   : > { %p31_p1 = scmp.ge.s32.totalorder %s29_s27, 2  ;;  %p278_p2 = scmp.lt.s32.totalorder %s684_s26, 3 }
   0x5   : > { %s800_s27 = smov (%p31_p1, %s29_s27), 0  ;;  %p279_p3 = pnand %p616_p0, %p278_p2 }
   0x6   : > { %v398_v0 = vld [vmem:[%s793_s4] sm:$0xff] (!%p279_p3)  ;;  %v686_v2 = vmov (!%p279_p3), 0   ;;  %v687_v5 = vmov (!%p279_p3), 2   ;;  %v688_v6 = vmov (!%p279_p3), 1   ;;  %v689_v7 = vmov (!%p279_p3), 3   ;;  %p327_p4 = scmp.lt.s32.totalorder (!%p279_p3), %s676_s24, 1 }
   0x7   : > { %282 = sbr.rel (%p279_p3) target bundleno = 158 (0x9e), region = 48  ;;  %v356_v1 = vld [vmem:[%s791_s2] sm:$0xff] (!%p279_p3)  ;;  %657 = vset.pattern.permute.xlu1 (!%p279_p3), %v686_v2  ;;  %656 = vset.pattern.permute.xlu0 (!%p279_p3), %v686_v2  ;;  %v364_v8 = vlaneseq (!%p279_p3) }
   0x8   : > { %401 = vperm.xlu1 (!%p279_p3), %657, %v398_v0   ;;  %360 = vperm.xlu0 (!%p279_p3), %656, %v356_v1   ;;  %v406_v3 = vld [vmem:[%s790_s1] sm:$0xff] (!%p279_p3) }
   0x9   : > { %v376_v4 = vld [vmem:[%s792_s3] sm:$0xff] (!%p279_p3)  ;;  %v365_v9 = vshrl.u32 (!%p279_p3), %v364_v8, 7 }
   0xa   : > { %v357_v12 = vld [vmem:[%s794_s5] sm:$0x3] (!%p279_p3) }
   0xb   : > { %v366_v10 = vsub.s32 (!%p279_p3), 0, %v365_v9  ;;  %v370_v11 = vsub.s32 (!%p279_p3), 1, %v365_v9  ;;  %v377_v13 = vld [vmem:[%s795_s6] sm:$0x3] (!%p279_p3) }
   0xc   : > { %410 = vperm.xlu1 (!%p279_p3), %657, %v406_v3   ;;  %380 = vperm.xlu0 (!%p279_p3), %656, %v376_v4  }
   0xd   : > { %v367_v16 = vrot.slane (!%p279_p3), %v357_v12, %v366_v10  ;;  %v371_v17 = vrot.slane (!%p279_p3), %v357_v12, %v370_v11  ;;  %v387_v19 = vrot.slane (!%p279_p3), %v377_v13, %v366_v10  ;;  %v391_v20 = vrot.slane (!%p279_p3), %v377_v13, %v370_v11 }
   0xe   : > { %s802_s24 = smov (!%p327_p4, %s676_s24), 1 }
   0xf   : > { %s626_s13 = sshll.u32 %s802_s24, 3  ;;  %s627_s21 = sshll.u32 %s802_s24, 4 }
  0x10   : > { %659 = vset.pattern.permute.xlu1 %v687_v5  ;;  %658 = vset.pattern.permute.xlu0 %v688_v6  ;;  %s334_s18 = scalar_lea.vmem %s789_s0, %s626_s13  ;;  %s354_s28 = scalar_lea.vmem %s796_s7, %s627_s21 }
  0x11   : > { %452 = vperm.xlu1 %659, %v406_v3   ;;  %431 = vperm.xlu0 %658, %v406_v3   ;;  %v407_v18 = vld [vmem:[%s334_s18] ss:$4 sm:$0x3]  ;;  %v621_v21 = vld [vmem:[%s334_s18 + $0x1] ss:$4 sm:$0x3] }
  0x12   : > { %v417_v23 = vrot.slane %v407_v18, %v366_v10  ;;  %v421_v24 = vrot.slane %v407_v18, %v370_v11  ;;  %v622_v30 = vld [vmem:[%s334_s18 + $0x2] ss:$4 sm:$0x3]  ;;  %v438_v31 = vrot.slane %v621_v21, %v366_v10  ;;  %v442_v32 = vrot.slane %v621_v21, %v370_v11  ;;  %v623_v37 = vld [vmem:[%s334_s18 + $0x3] ss:$4 sm:$0x3] }
  0x13   : > { %v459_v35 = vrot.slane %v622_v30, %v366_v10  ;;  %v463_v36 = vrot.slane %v622_v30, %v370_v11  ;;  %v480_v48 = vrot.slane %v623_v37, %v366_v10  ;;  %v484_v49 = vrot.slane %v623_v37, %v370_v11 }
  0x15   : > { %660 = vset.pattern.permute.xlu1 %v689_v7  ;;  %661 = vset.pattern.permute.xlu0 %v689_v7 }
  0x16   : > { %473 = vperm.xlu1 %660, %v406_v3  }
  0x87   : > { %v402_v14 = vpop.permute.xlu1 %401  ;;  %v361_v15 = vpop.permute.xlu0 %360 }
  0x88   : > { %v374_v26 = vmul.f32 %v367_v16, %v361_v15  ;;  %v375_v27 = vmul.f32 %v371_v17, %v361_v15 }
  0x8b   : > { %v411_v22 = vpop.permute.xlu1 %410  ;;  %v381_v25 = vpop.permute.xlu0 %380 }
  0x8c   : > { %v394_v28 = vmul.f32 %v387_v19, %v381_v25  ;;  %v395_v29 = vmul.f32 %v391_v20, %v381_v25  ;;  %v424_v38 = vmul.f32 %v417_v23, %v411_v22  ;;  %v425_v39 = vmul.f32 %v421_v24, %v411_v22 }
  0x8e   : > { %v396_v33 = vadd.f32 %v394_v28, %v374_v26  ;;  %v397_v34 = vadd.f32 %v395_v29, %v375_v27 }
  0x90   : > { %v404_v40 = vadd.f32 %v402_v14, %v396_v33  ;;  %v405_v41 = vadd.f32 %v402_v14, %v397_v34  ;;  %v453_v42 = vpop.permute.xlu1 %452  ;;  %v432_v43 = vpop.permute.xlu0 %431 }
  0x91   : > { %v445_v44 = vmul.f32 %v438_v31, %v432_v43  ;;  %v446_v45 = vmul.f32 %v442_v32, %v432_v43  ;;  %v466_v50 = vmul.f32 %v459_v35, %v453_v42  ;;  %v467_v51 = vmul.f32 %v463_v36, %v453_v42 }
  0x92   : > { %v426_v46 = vadd.f32 %v424_v38, %v404_v40  ;;  %v427_v47 = vadd.f32 %v425_v39, %v405_v41 }
  0x94   : > { %v447_v52 = vadd.f32 %v445_v44, %v426_v46  ;;  %v448_v53 = vadd.f32 %v446_v45, %v427_v47 }
  0x95   : > { %v474_v54 = vpop.permute.xlu1 %473 }
  0x96   : > { %v468_v55 = vadd.f32 %v466_v50, %v447_v52  ;;  %v469_v56 = vadd.f32 %v467_v51, %v448_v53  ;;  %v487_v57 = vmul.f32 %v480_v48, %v474_v54  ;;  %v488_v58 = vmul.f32 %v484_v49, %v474_v54 }
  0x98   : > { %v489_v59 = vadd.f32 %v487_v57, %v468_v55  ;;  %v490_v60 = vadd.f32 %v488_v58, %v469_v56 }
  0x9a   : > { %vm491_vm0 = vcmp.ge.f32.partialorder %v489_v59, 0.0  ;;  %vm492_vm1 = vcmp.ge.f32.partialorder %v490_v60, 0.0  ;;  %v493_v61 = vmul.f32 0.1, %v489_v59  ;;  %v494_v62 = vmul.f32 0.1, %v490_v60 }
  0x9c   : > { %v495_v63 = vsel %vm491_vm0, %v489_v59, %v493_v61  ;;  %v496_v0 = vsel %vm492_vm1, %v490_v60, %v494_v62 }
  0x9d   : > { %497 = vst [vmem:[%s354_s28] sm:$0xff] %v495_v63  ;;  %498 = vst [vmem:[%s354_s28 + $0x8] sm:$0xff] %v496_v0 }
  0x9e PF: > { %s17_s26 = sadd.s32 1, %s684_s26   ;;  %s797_s24 = smov %s680_s25 }
  0x9f   : > { %p14_p5 = scmp.ge.s32.totalorder %s17_s26, 4   ;;  %s798_s25 = smov %s800_s27 }
  0xa1   :  { %16 = sbr.rel (!%p14_p5) target bundleno = 2 (0x2), region = 87 }

</bundles_post_ra>
